<compile_context>
chip_gen: v7x
topology: tpu7x:2x2x1
jax: 0.10.0
libtpu: 0.0.40
codegen_flags: <defaults>
</compile_context>

<pallas_src>
import math

import jax
import jax.numpy as jnp
from jax import lax
from jax.experimental import pallas as pl
from jax.experimental.pallas import tpu as pltpu


def _pe_kernel(x_ref, pe_ref, w_ref, b_ref, g_ref, beta_ref, o_ref):
    # x_ref/o_ref: (TS, D) f32   pe_ref: (TS, D) f32
    # w_ref: (D, D) in matmul dtype (bf16 or f32)   b/g/beta: (1, D) f32
    x = x_ref[...] + pe_ref[...]                                      # PE add (f32, VPU)
    y = jnp.dot(x.astype(w_ref.dtype), w_ref[...],                    # Linear on MXU,
                preferred_element_type=jnp.float32)                   # f32 accumulate
    y = y + b_ref[...]

    # LayerNorm over last dim (eps = 1e-5, PyTorch default).
    # Single-pass stats: E[y] and E[y^2], var = max(E[y^2] - E[y]^2, 0).
    inv_d = 1.0 / y.shape[-1]
    mean = jnp.sum(y, axis=-1, keepdims=True) * inv_d
    mean_sq = jnp.sum(y * y, axis=-1, keepdims=True) * inv_d
    var = jnp.maximum(mean_sq - mean * mean, 0.0)
    yn = (y - mean) * lax.rsqrt(var + 1e-5)
    yn = yn * g_ref[...] + beta_ref[...]

    # Exact erf GELU (matches nn.GELU() default numerics).
    out = 0.5 * yn * (1.0 + lax.erf(yn * (1.0 / math.sqrt(2.0))))
    o_ref[...] = out.astype(o_ref.dtype)
    # TODO(synk): nn.Dropout is identity in eval mode; training-mode dropout
    # (pltpu.prng_seed / prng_random_bits) is not implemented.


def time_series_positional_encoding(x, pe, w_t, b, gamma, beta, *,
                                    seq_tile=512,
                                    matmul_dtype=jnp.bfloat16):
    """x: (B, S, D) f32. pe: (max_len >= S, D) f32. w_t: (D, D) = W.T.
    b/gamma/beta: (1, D) f32. Returns (B, S, D) f32."""
    B, S, D = x.shape

    # Sequence tile: full extent for small S, otherwise a multiple-of-8 tile
    # (satisfies the (8,128) block rule). 256-512 rows keeps the MXU fed while
    # capping per-step VMEM residency.
    TS = S if S <= seq_tile else seq_tile
    assert TS == S or TS % 8 == 0
    n_s = pl.cdiv(S, TS)

    pe_s = pe[:S]                            # slice used by forward
    w_mm = w_t.astype(matmul_dtype)          # bf16 weight: half VMEM/HBM, MXU peak rate

    # Explicit VMEM budget: double-buffered x/pe/out tiles + weight (2 bufs) + vectors.
    w_bytes = D * D * jnp.dtype(matmul_dtype).itemsize
    per_step = 3 * (2 * TS * D * 4) + 2 * w_bytes + 6 * D * 4
    vmem_limit = int(min(max(2 * per_step, 8 * 2**20), 64 * 2**20))

    cost = pl.CostEstimate(
        flops=2 * B * S * D * D + 12 * B * S * D,
        transcendentals=B * S * D + B * S,          # erf per element + rsqrt per row
        bytes_accessed=(x.size + pe_s.size + B * S * D + 3 * D) * 4 + w_bytes,
    )

    return pl.pallas_call(
        _pe_kernel,
        out_shape=jax.ShapeDtypeStruct((B, S, D), x.dtype),
        grid_spec=pltpu.PrefetchScalarGridSpec(
            num_scalar_prefetch=0,
            grid=(B, n_s),
            in_specs=[
                pl.BlockSpec((pl.Squeezed(), TS, D), lambda b_, s: (b_, s, 0)),  # x
                pl.BlockSpec((TS, D), lambda b_, s: (s, 0)),                     # pe (per S-tile)
                pl.BlockSpec((D, D), lambda b_, s: (0, 0)),                      # W^T (resident)
                pl.BlockSpec((1, D), lambda b_, s: (0, 0)),                      # bias
                pl.BlockSpec((1, D), lambda b_, s: (0, 0)),                      # gamma
                pl.BlockSpec((1, D), lambda b_, s: (0, 0)),                      # beta
            ],
            out_specs=pl.BlockSpec((pl.Squeezed(), TS, D), lambda b_, s: (b_, s, 0)),
        ),
        compiler_params=pltpu.CompilerParams(
            dimension_semantics=("parallel", "parallel"),
            vmem_limit_bytes=vmem_limit,
        ),
        cost_estimate=cost,
    )(x, pe_s, w_mm, b, gamma, beta)


def make_sinusoidal_pe(max_len, d_model):
    """Matches the torch construction in __init__ (learnable param's init value)."""
    position = jnp.arange(0, max_len, dtype=jnp.float32)[:, None]             # (max_len, 1)
    div_term = jnp.exp(jnp.arange(0, d_model, 2, dtype=jnp.float32)
                       * (-math.log(10000.0) / d_model))                       # (d_model/2,)
    pe = jnp.zeros((max_len, d_model), dtype=jnp.float32)
    pe = pe.at[:, 0::2].set(jnp.sin(position * div_term))
    pe = pe.at[:, 1::2].set(jnp.cos(position * div_term))
    return pe


def reference_forward(x, pe, w_t, b, gamma, beta):
    """Pure-JAX f32 reference for correctness checking."""
    y = x + pe[None, : x.shape[1], :]
    y = y @ w_t + b
    mean = jnp.mean(y, axis=-1, keepdims=True)
    var = jnp.mean((y - mean) ** 2, axis=-1, keepdims=True)
    yn = (y - mean) / jnp.sqrt(var + 1e-5)
    yn = yn * gamma + beta
    return 0.5 * yn * (1.0 + lax.erf(yn / jnp.sqrt(2.0)))


if __name__ == "__main__":
    d_model = 128      # lane-aligned
    B, S = 2, 8
    max_len = 64       # only first S rows are used

    key = jax.random.PRNGKey(0)
    kx, kw, kb = jax.random.split(key, 3)

    x = jax.random.normal(kx, (B, S, d_model), dtype=jnp.float32)

    # Deterministic synthetic parameters (shapes from the module's __init__):
    pe = make_sinusoidal_pe(max_len, d_model)                        # nn.Parameter init value
    bound = 1.0 / math.sqrt(d_model)
    w = jax.random.uniform(kw, (d_model, d_model), jnp.float32, -bound, bound)  # nn.Linear weight
    b = jax.random.uniform(kb, (1, d_model), jnp.float32, -bound, bound)        # nn.Linear bias
    w_t = w.T                                                        # pre-transpose for x @ W^T
    gamma = jnp.ones((1, d_model), jnp.float32)                      # LayerNorm weight init
    beta = jnp.zeros((1, d_model), jnp.float32)                      # LayerNorm bias init

    ref = reference_forward(x, pe, w_t, b, gamma, beta)

    # Exact-math variant (f32 matmul): must match the f32 reference tightly.
    out_f32 = time_series_positional_encoding(
        x, pe, w_t, b, gamma, beta, matmul_dtype=jnp.float32)
    out_f32 = jax.block_until_ready(out_f32)
    assert out_f32.shape == (B, S, d_model)
    assert jnp.allclose(out_f32, ref, atol=1e-4, rtol=1e-4), "f32 kernel mismatch vs reference"

    # Default perf variant (bf16 matmul operands, f32 accumulation).
    out_bf16 = time_series_positional_encoding(x, pe, w_t, b, gamma, beta)
    out_bf16 = jax.block_until_ready(out_bf16)
    assert out_bf16.shape == (B, S, d_model)
    assert jnp.allclose(out_bf16, ref, atol=3e-2, rtol=3e-2), "bf16 kernel mismatch vs reference"

    print("KERNEL_OK")
</pallas_src>

<mosaic_0001>
module attributes {stable_mosaic.version = 11 : i64} {
  func.func @_pe_kernel(%arg0: i32, %arg1: i32, %arg2: memref<1x8x128xf32, #tpu.memory_space<vmem>>, %arg3: memref<8x128xf32, #tpu.memory_space<vmem>>, %arg4: memref<128x128xf32, #tpu.memory_space<vmem>>, %arg5: memref<1x128xf32, #tpu.memory_space<vmem>>, %arg6: memref<1x128xf32, #tpu.memory_space<vmem>>, %arg7: memref<1x128xf32, #tpu.memory_space<vmem>>, %arg8: memref<1x8x128xf32, #tpu.memory_space<vmem>>) attributes {dimension_semantics = [#tpu.dimension_semantics<parallel>, #tpu.dimension_semantics<parallel>], iteration_bounds = array<i64: 2, 1>, scalar_prefetch = 0 : i64, scratch_operands = 0 : i64, tpu.core_type = #tpu.core_type<tc>, window_params = [{transform_indices = @transform_0, window_bounds = array<i64: 1, 8, 128>}, {transform_indices = @transform_1, window_bounds = array<i64: 8, 128>}, {pipeline_mode = #tpu.pipeline_mode<synchronous>, transform_indices = @transform_2, window_bounds = array<i64: 128, 128>}, {pipeline_mode = #tpu.pipeline_mode<synchronous>, transform_indices = @transform_3, window_bounds = array<i64: 1, 128>}, {pipeline_mode = #tpu.pipeline_mode<synchronous>, transform_indices = @transform_4, window_bounds = array<i64: 1, 128>}, {pipeline_mode = #tpu.pipeline_mode<synchronous>, transform_indices = @transform_5, window_bounds = array<i64: 1, 128>}, {transform_indices = @transform_6, window_bounds = array<i64: 1, 8, 128>}]} {
    %c0 = arith.constant 0 : index
    %c0_0 = arith.constant 0 : index
    %c0_1 = arith.constant 0 : index
    %0 = vector.load %arg2[%c0, %c0_0, %c0_1] : memref<1x8x128xf32, #tpu.memory_space<vmem>>, vector<1x8x128xf32>
    %1 = vector.shape_cast %0 : vector<1x8x128xf32> to vector<8x128xf32>
    %c0_2 = arith.constant 0 : index
    %c0_3 = arith.constant 0 : index
    %2 = vector.load %arg3[%c0_2, %c0_3] : memref<8x128xf32, #tpu.memory_space<vmem>>, vector<8x128xf32>
    %3 = arith.addf %1, %2 : vector<8x128xf32>
    %c0_4 = arith.constant 0 : index
    %c0_5 = arith.constant 0 : index
    %4 = vector.load %arg4[%c0_4, %c0_5] : memref<128x128xf32, #tpu.memory_space<vmem>>, vector<128x128xf32>
    %cst = arith.constant dense<0.000000e+00> : vector<8x128xf32>
    %5 = tpu.matmul %3, %4, %cst {dimension_numbers = #tpu.dot_dimension_numbers<[1], [0], [0], [1], [0, 0, 1, 1], [], []>} : vector<8x128xf32>, vector<128x128xf32>, vector<8x128xf32> -> vector<8x128xf32>
    %c0_6 = arith.constant 0 : index
    %c0_7 = arith.constant 0 : index
    %6 = vector.load %arg5[%c0_6, %c0_7] : memref<1x128xf32, #tpu.memory_space<vmem>>, vector<1x128xf32>
    %7 = vector.broadcast %6 : vector<1x128xf32> to vector<8x128xf32>
    %8 = arith.addf %5, %7 : vector<8x128xf32>
    %cst_8 = arith.constant dense<0.000000e+00> : vector<8xf32>
    %9 = vector.multi_reduction <add>, %8, %cst_8 [1] : vector<8x128xf32> to vector<8xf32>
    %10 = vector.shape_cast %9 : vector<8xf32> to vector<8x1xf32>
    %cst_9 = arith.constant 7.812500e-03 : f32
    %11 = vector.broadcast %cst_9 : f32 to vector<8x1xf32>
    %12 = arith.mulf %10, %11 : vector<8x1xf32>
    %13 = arith.mulf %8, %8 : vector<8x128xf32>
    %cst_10 = arith.constant dense<0.000000e+00> : vector<8xf32>
    %14 = vector.multi_reduction <add>, %13, %cst_10 [1] : vector<8x128xf32> to vector<8xf32>
    %15 = vector.shape_cast %14 : vector<8xf32> to vector<8x1xf32>
    %cst_11 = arith.constant 7.812500e-03 : f32
    %16 = vector.broadcast %cst_11 : f32 to vector<8x1xf32>
    %17 = arith.mulf %15, %16 : vector<8x1xf32>
    %18 = arith.mulf %12, %12 : vector<8x1xf32>
    %19 = arith.subf %17, %18 : vector<8x1xf32>
    %cst_12 = arith.constant 0.000000e+00 : f32
    %20 = vector.broadcast %cst_12 : f32 to vector<8x1xf32>
    %21 = arith.maximumf %19, %20 : vector<8x1xf32>
    %22 = vector.broadcast %12 : vector<8x1xf32> to vector<8x128xf32>
    %23 = arith.subf %8, %22 : vector<8x128xf32>
    %cst_13 = arith.constant 9.99999974E-6 : f32
    %24 = vector.broadcast %cst_13 : f32 to vector<8x1xf32>
    %25 = arith.addf %21, %24 : vector<8x1xf32>
    %26 = math.rsqrt %25 : vector<8x1xf32>
    %27 = vector.broadcast %26 : vector<8x1xf32> to vector<8x128xf32>
    %28 = arith.mulf %23, %27 : vector<8x128xf32>
    %c0_14 = arith.constant 0 : index
    %c0_15 = arith.constant 0 : index
    %29 = vector.load %arg6[%c0_14, %c0_15] : memref<1x128xf32, #tpu.memory_space<vmem>>, vector<1x128xf32>
    %30 = vector.broadcast %29 : vector<1x128xf32> to vector<8x128xf32>
    %31 = arith.mulf %28, %30 : vector<8x128xf32>
    %c0_16 = arith.constant 0 : index
    %c0_17 = arith.constant 0 : index
    %32 = vector.load %arg7[%c0_16, %c0_17] : memref<1x128xf32, #tpu.memory_space<vmem>>, vector<1x128xf32>
    %33 = vector.broadcast %32 : vector<1x128xf32> to vector<8x128xf32>
    %34 = arith.addf %31, %33 : vector<8x128xf32>
    %cst_18 = arith.constant 5.000000e-01 : f32
    %35 = vector.broadcast %cst_18 : f32 to vector<8x128xf32>
    %36 = arith.mulf %35, %34 : vector<8x128xf32>
    %cst_19 = arith.constant 0.707106769 : f32
    %37 = vector.broadcast %cst_19 : f32 to vector<8x128xf32>
    %38 = arith.mulf %34, %37 : vector<8x128xf32>
    %39 = math.erf %38 : vector<8x128xf32>
    %cst_20 = arith.constant 1.000000e+00 : f32
    %40 = vector.broadcast %cst_20 : f32 to vector<8x128xf32>
    %41 = arith.addf %40, %39 : vector<8x128xf32>
    %42 = arith.mulf %36, %41 : vector<8x128xf32>
    %c0_21 = arith.constant 0 : index
    %c0_22 = arith.constant 0 : index
    %c0_23 = arith.constant 0 : index
    %43 = vector.load %arg8[%c0_21, %c0_22, %c0_23] : memref<1x8x128xf32, #tpu.memory_space<vmem>>, vector<1x8x128xf32>
    %44 = vector.shape_cast %43 : vector<1x8x128xf32> to vector<8x128xf32>
    %45 = vector.shape_cast %42 : vector<8x128xf32> to vector<1x8x128xf32>
    tpu.vector_store %arg8[%c0_21, %c0_22, %c0_23], %45 {strides = array<i32>} : memref<1x8x128xf32, #tpu.memory_space<vmem>>, vector<1x8x128xf32>,
    return
  }
  func.func @transform_0(%arg0: i32, %arg1: i32) -> (i32, i32, i32) {
    %c0_i32 = arith.constant 0 : i32
    %c0_i32_0 = arith.constant 0 : i32
    return %arg0, %arg1, %c0_i32 : i32, i32, i32
  }
  func.func @transform_1(%arg0: i32, %arg1: i32) -> (i32, i32) {
    %c0_i32 = arith.constant 0 : i32
    %c0_i32_0 = arith.constant 0 : i32
    return %arg1, %c0_i32 : i32, i32
  }
  func.func @transform_2(%arg0: i32, %arg1: i32) -> (i32, i32) {
    %c0_i32 = arith.constant 0 : i32
    %c0_i32_0 = arith.constant 0 : i32
    %c0_i32_1 = arith.constant 0 : i32
    return %c0_i32, %c0_i32_0 : i32, i32
  }
  func.func @transform_3(%arg0: i32, %arg1: i32) -> (i32, i32) {
    %c0_i32 = arith.constant 0 : i32
    %c0_i32_0 = arith.constant 0 : i32
    %c0_i32_1 = arith.constant 0 : i32
    return %c0_i32, %c0_i32_0 : i32, i32
  }
  func.func @transform_4(%arg0: i32, %arg1: i32) -> (i32, i32) {
    %c0_i32 = arith.constant 0 : i32
    %c0_i32_0 = arith.constant 0 : i32
    %c0_i32_1 = arith.constant 0 : i32
    return %c0_i32, %c0_i32_0 : i32, i32
  }
  func.func @transform_5(%arg0: i32, %arg1: i32) -> (i32, i32) {
    %c0_i32 = arith.constant 0 : i32
    %c0_i32_0 = arith.constant 0 : i32
    %c0_i32_1 = arith.constant 0 : i32
    return %c0_i32, %c0_i32_0 : i32, i32
  }
  func.func @transform_6(%arg0: i32, %arg1: i32) -> (i32, i32, i32) {
    %c0_i32 = arith.constant 0 : i32
    %c0_i32_0 = arith.constant 0 : i32
    return %arg0, %arg1, %c0_i32 : i32, i32, i32
  }
}

</mosaic_0001>

<bundles_post_ra>
// kernel: tpu_custom_call.1
= control target key start
LH: loop header
LB: loop body
LE: loop exit
PB: predicated region body
PF: predicated region fallthrough
CT: control target
= control target key end

     0   :  { %11 = vsyncpa [#allocation3], 0  ;;  %s1231_s0 = inlined_call_operand.hbm [shape: f32[2,8,128], index: 0, kind: input, shape index: {}]   ;;  %s1232_s1 = inlined_call_operand.hbm [shape: f32[8,128], index: 1, kind: input, shape index: {}]   ;;  %s1233_s2 = inlined_call_operand.hbm [shape: f32[128,128], index: 2, kind: input, shape index: {}]   ;;  %s1234_s3 = inlined_call_operand.vmem [shape: f32[1,128], index: 3, kind: input, shape index: {}]   ;;  %s1235_s4 = inlined_call_operand.vmem [shape: f32[1,128], index: 4, kind: input, shape index: {}]   ;;  %s1236_s5 = inlined_call_operand.vmem [shape: f32[1,128], index: 5, kind: input, shape index: {}]   ;;  %s1237_s6 = inlined_call_operand.hbm [shape: f32[2,8,128], index: 6, kind: output, shape index: {}]  }
   0x1   :  { %13 = vsyncpa [#allocation3 + $0x1], 0 }
   0x2   :  { %14 = vsyncpa [#allocation6], 0 }
   0x3   :  { %15 = vsyncpa [#allocation4], 0 }
   0x4   :  { %17 = vsyncpa [#allocation4 + $0x1], 0  ;;  %s972_s21 = smov 0   ;;  %s974_s22 = smov 0  }
   0x5   :  { %s976_s23 = smov 0   ;;  %s978_s24 = smov 0  }
   0x6   :  { %s980_s25 = smov 0   ;;  %s982_s26 = smov 0  }
   0x7 LB: > { %s566_s27 = sadd.s32 4294967295, %s926_s26   ;;  %s567_s28 = sadd.s32 4294967294, %s926_s26   ;;  %s926_s26 = sphi %s982_s26, %s23_s26   ;;  %s922_s25 = sphi %s980_s25, %s1260_s25   ;;  %s918_s24 = sphi %s978_s24, %s1259_s24   ;;  %s914_s23 = sphi %s976_s23, %s1258_s23   ;;  %s910_s22 = sphi %s974_s22, %s1257_s22   ;;  %s906_s21 = sphi %s972_s21, %s1256_s21  }
   0x8   : > { %p57_p0 = scmp.ne.s32.totalorder %s910_s22, %s906_s21  ;;  %p1006_p1 = scmp.eq.s32.totalorder %s566_s27, 0 }
   0x9   : > { %p1010_p2 = scmp.eq.s32.totalorder %s566_s27, 1  ;;  %p199_p3 = scmp.eq.s32.totalorder %s567_s28, 1 }
   0xa   : > { %s1242_s29 = scalar_select %p1006_p1, 1, 0 }
   0xb   : > { %s1243_s30 = scalar_select %p1010_p2, 1, 0 }
   0xc   : > { %p1016_p4 = por %p1006_p1, %p57_p0  ;;  %p568_p5 = scmp.ge.s32.totalorder %s926_s26, 1 }
   0xd   : > { %p1021_p6 = por %p199_p3, %p57_p0  ;;  %p206_p7 = scmp.lt.s32.totalorder %s926_s26, 3 }
   0xe   : > { %s1244_s7 = scalar_select %p1016_p4, 1, 0 }
   0xf   : > { %s1245_s8 = scalar_select %p1021_p6, 1, 0 }
  0x10   : > { %p1026_p8 = pnand %p568_p5, %p206_p7  ;;  %s928_s10 = smov [#allocation5]  }
  0x11   : > { %s221_s11 = sshll.u32 %s928_s10, 4  ;;  %s929_s12 = smov [#allocation7]   ;;  %s222_s11 = int_to_ptr.vmem [resolvable:$true] %s221_s11 }
  0x12   : > { %s1246_s9 = scalar_select %p1026_p8, 1, 0 }
  0x13   : > { %p674_p10 = pneg %p1026_p8  ;;  %s231_s13 = sshll.u32 %s929_s12, 4  ;;  %s1039_s13 = int_to_ptr.vmem [resolvable:$true] %s231_s13 }
  0x14   : > { %s754_s17 = scalar_lea.hbm %s1232_s1, 128 }
  0x15   : > { %p1035_p11 = pnand %p674_p10, %p1006_p1  ;;  %p755_p12 = scmp.ne.s32.totalorder %s1232_s1, %s754_s17 }
  0x16   : > { %p761_p5 = scmp.lt.u32.totalorder %s754_s17, %s1232_s1 }
  0x17   : > { %p756_p13 = pneg %p1035_p11 }
  0x19   : > { %p757_p0 = pnand %p756_p13, %p755_p12 }
  0x1b   : > { %p758_p3 = pneg %p757_p0 }
  0x1d   : > { %p763_p7 = pnand %p761_p5, %p758_p3 }
  0x1f   : > { %766 = shalt.err (!%p763_p7)
}
  0x20   : > { %s767_s28 = scalar_lea.vmem %s222_s11, 128  ;;  %p775_p1 = scmp.lt.s32.totalorder %s222_s11, %s222_s11 }
  0x21   : > { %p768_p10 = scmp.ne.s32.totalorder %s222_s11, %s767_s28  ;;  %p776_p4 = scmp.lt.s32.totalorder %s767_s28, %s767_s28 }
  0x23   : > { %p770_p9 = pnand %p768_p10, %p756_p13  ;;  %p777_p8 = por %p776_p4, %p775_p1 }
  0x25   : > { %p771_p6 = pneg %p770_p9 }
  0x27   : > { %p778_p2 = pnand %p777_p8, %p771_p6 }
  0x29   : > { %781 = shalt.err (!%p778_p2)
}
  0x2a   : > { %677 = dma.hbm_to_vmem [thread:$0]  (!%p1035_p11), %s1232_s1, 128, %s222_s11, [#allocation6]  }
  0x2b   : > { %s782_s17 = scalar_lea.hbm %s1233_s2, 2048 }
  0x2c   : > { %p783_p9 = scmp.ne.s32.totalorder %s1233_s2, %s782_s17  ;;  %p789_p2 = scmp.lt.u32.totalorder %s782_s17, %s1233_s2 }
  0x2e   : > { %p785_p1 = pnand %p783_p9, %p756_p13 }
  0x30   : > { %p786_p4 = pneg %p785_p1 }
  0x32   : > { %p791_p6 = pnand %p789_p2, %p786_p4 }
  0x34   : > { %794 = shalt.err (!%p791_p6)
}
  0x35   : > { %s795_s11 = scalar_lea.vmem %s1039_s13, 2048  ;;  %p803_p3 = scmp.lt.s32.totalorder %s1039_s13, %s1039_s13 }
  0x36   : > { %p796_p8 = scmp.ne.s32.totalorder %s1039_s13, %s795_s11  ;;  %p804_p5 = scmp.lt.s32.totalorder %s795_s11, %s795_s11 }
  0x38   : > { %p798_p12 = pnand %p796_p8, %p756_p13  ;;  %p805_p7 = por %p804_p5, %p803_p3 }
  0x3a   : > { %p799_p0 = pneg %p798_p12 }
  0x3c   : > { %p806_p10 = pnand %p805_p7, %p799_p0 }
  0x3e   : > { %809 = shalt.err (!%p806_p10)
}
  0x3f   : > { %s930_s28 = smov 128   ;;  %s931_s10 = smov 8  }
  0x40   : > { %680 = dma.hbm_to_vmem [thread:$0]  (!%p1035_p11), %s1233_s2, 2048, %s1039_s13, [#allocation6], %s930_s28, %s930_s28, %s931_s10  }
  0x41   : > { %s35_s16 = sadd.s32 1, %s922_s25  ;;  %s44_s17 = sadd.s32 1, %s914_s23 }
  0x42   : > { %p37_p13 = scmp.ge.s32.totalorder %s35_s16, 2  ;;  %p51_p9 = scmp.ne.s32.totalorder %s914_s23, %s910_s22 }
  0x43   : > { %p52_p1 = scmp.eq.s32.totalorder %s926_s26, 0  ;;  %p691_p4 = scmp.lt.s32.totalorder %s926_s26, 2 }
  0x44   : > { %s1262_s16 = smov (%p37_p13, %s35_s16), 0  ;;  %p1248_p6 = scmp.ne.s32.totalorder %s1243_s30, 0 }
  0x45   : > { %p53_p2 = por %p52_p1, %p51_p9  ;;  %s39_s14 = ssub.s32 %s922_s25, %s1262_s16 }
  0x46   : > { %p1098_p8 = por %p1248_p6, %p51_p9  ;;  %s254_s19 = sand.u32 1, %s914_s23  }
  0x47   : > { %p42_p12 = scmp.eq.s32.totalorder %s39_s14, 0  ;;  %s572_s13 = sshll.u32 %s254_s19, 3 }
  0x48   : > { %s573_s20 = sshll.u32 %s922_s25, 7  ;;  %s258_s30 = scalar_lea.vmem [#allocation2], %s572_s13 }
  0x49   : > { %s1107_s27 = scalar_select %p42_p12, %s914_s23, %s44_s17  }
  0x4a   : > { %s1112_s10 = scalar_lea.hbm %s1231_s0, %s573_s20  ;;  %s266_s12 = sshll.u32 %s258_s30, 4  ;;  %s1120_s12 = int_to_ptr.vmem [resolvable:$true] %s266_s12 }
  0x4b   : > { %p1116_p11 = pnand %p691_p4, %p53_p2  ;;  %s255_s17 = scalar_lea.sflag [#allocation3], %s254_s19 }
  0x4c   : > { %s810_s14 = scalar_lea.hbm %s1112_s10, 128  ;;  %s815_s11 = scalar_lea.hbm %s1231_s0, 256 }
  0x4d   : > { %p811_p0 = scmp.ne.s32.totalorder %s1112_s10, %s810_s14  ;;  %p812_p3 = pneg %p1116_p11 }
  0x4e   : > { %p816_p10 = scmp.lt.u32.totalorder %s1112_s10, %s1231_s0  ;;  %p817_p13 = scmp.lt.u32.totalorder %s815_s11, %s810_s14 }
  0x4f   : > { %p813_p5 = pnand %p812_p3, %p811_p0  ;;  %p819_p1 = scmp.lt.u32.totalorder %s810_s14, %s1112_s10 }
  0x50   : > { %p818_p9 = por %p817_p13, %p816_p10 }
  0x51   : > { %p814_p7 = pneg %p813_p5 }
  0x52   : > { %p820_p4 = por %p819_p1, %p818_p9 }
  0x54   : > { %p821_p2 = pnand %p820_p4, %p814_p7 }
  0x56   : > { %824 = shalt.err (!%p821_p2)
}
  0x57   : > { %s825_s19 = scalar_lea.vmem %s1120_s12, 128  ;;  %s932_s13 = smov [#allocation2]  }
  0x58   : > { %p826_p6 = scmp.ne.s32.totalorder %s1120_s12, %s825_s19  ;;  %s830_s20 = sshll.u32 %s932_s13, 4  ;;  %s831_s20 = int_to_ptr.vmem [resolvable:$false] %s830_s20 }
  0x59   : > { %s832_s28 = scalar_lea.vmem %s831_s20, 256  ;;  %p833_p5 = scmp.lt.s32.totalorder %s1120_s12, %s831_s20 }
  0x5a   : > { %p828_p12 = pnand %p826_p6, %p812_p3  ;;  %p834_p10 = scmp.lt.s32.totalorder %s832_s28, %s825_s19 }
  0x5c   : > { %p829_p0 = pneg %p828_p12  ;;  %p835_p13 = por %p834_p10, %p833_p5 }
  0x5e   : > { %p836_p9 = pnand %p835_p13, %p829_p0 }
  0x60   : > { %839 = shalt.err (!%p836_p9)
}
  0x61   : > { %684 = dma.hbm_to_vmem [thread:$0]  (!%p1116_p11), %s1112_s10, 128, %s1120_s12, %s255_s17  }
  0x62   : > { %p1251_p7 = scmp.ne.s32.totalorder %s1246_s9, 0 }
  0x63   : > { %s1150_s14 = sand.u32 (!%p1251_p7), 1, %s910_s22   ;;  %p1252_p3 = scmp.ne.s32.totalorder (!%p1251_p7), %s1244_s7, 0 }
  0x64   : > { %275 = sbr.rel (%p1251_p7) target bundleno = 562 (0x232), region = 44  ;;  %s575_s11 = sshll.u32 (!%p1251_p7), %s1150_s14, 3 }
  0x65   : > { %s278_s30 = scalar_lea.sflag (!%p1251_p7), [#allocation3], %s1150_s14  ;;  %s1156_s19 = scalar_lea.vmem (!%p1251_p7), [#allocation2], %s575_s11 }
  0x6b   : > { %893 = dma.done.wait (%p1252_p3), %s278_s30, 128  }
  0x6c   : > { %895 = vsyncadd (%p1252_p3), %s278_s30, 4294967168  ;;  %p1253_p11 = scmp.ne.s32.totalorder %s1242_s29, 0 }
  0x6e   : > { %897 = dma.done.wait (%p1253_p11), [#allocation6], 2176  }
  0x6f   : > { %899 = vsyncadd (%p1253_p11), [#allocation6], 4294965120  ;;  %v933_v0 = vmov 0.0|0.0   ;;  %vm934_vm0 = vmmov 0   ;;  %v935_v1 = vmov 0.0   ;;  %v321_v2 = vld [vmem:[#allocation7] sm:$0xff] }
  0x70   : > { %638 = vmatprep.subr.bf16.mxu0 %v933_v0  ;;  %635 = vmatprep.mubr.msk.f32.mxu0 %vm934_vm0, %v935_v1  ;;  %v322_v3 = vld [vmem:[#allocation7 + $0x8] sm:$0xff]  ;;  %v323_v4 = vld [vmem:[#allocation7 + $0x10] sm:$0xff]  ;;  %v324_v6 = vld [vmem:[#allocation7 + $0x18] sm:$0xff]  ;;  %s583_s17 = sshll.u32 %s918_s24, 7  ;;  %s317_s13 = scalar_lea.vmem [#allocation8], %s575_s11 }
  0x71   : > { %v639_v5 = vpack.c.bf16 %v322_v3, %v321_v2  ;;  %v642_v7 = vpack.c.bf16 %v324_v6, %v323_v4  ;;  %v325_v8 = vld [vmem:[#allocation7 + $0x20] sm:$0xff]  ;;  %v326_v9 = vld [vmem:[#allocation7 + $0x28] sm:$0xff]  ;;  %v327_v11 = vld [vmem:[#allocation7 + $0x30] sm:$0xff]  ;;  %s465_s20 = sshll.u32 %s317_s13, 4  ;;  %s451_s29 = scalar_lea.sflag [#allocation4], %s1150_s14  ;;  %s1184_s20 = int_to_ptr.vmem [resolvable:$true] %s465_s20 }
  0x72   : > { %v645_v10 = vpack.c.bf16 %v326_v9, %v325_v8  ;;  %v328_v12 = vld [vmem:[#allocation7 + $0x38] sm:$0xff]  ;;  %v329_v14 = vld [vmem:[#allocation7 + $0x40] sm:$0xff]  ;;  %v330_v15 = vld [vmem:[#allocation7 + $0x48] sm:$0xff]  ;;  %s840_s7 = scalar_lea.vmem %s1184_s20, 128  ;;  %s936_s24 = smov [#allocation8]  }
  0x73   : > { %640 = vmatpush3.bf16.msra.mxu0 %v639_v5  ;;  %v648_v13 = vpack.c.bf16 %v328_v12, %v327_v11  ;;  %v651_v16 = vpack.c.bf16 %v330_v15, %v329_v14  ;;  %v331_v17 = vld [vmem:[#allocation7 + $0x50] sm:$0xff]  ;;  %v332_v18 = vld [vmem:[#allocation7 + $0x58] sm:$0xff]  ;;  %v333_v20 = vld [vmem:[#allocation7 + $0x60] sm:$0xff]  ;;  %p841_p1 = scmp.ne.s32.totalorder %s1184_s20, %s840_s7  ;;  %s844_s11 = sshll.u32 %s936_s24, 4  ;;  %s845_s11 = int_to_ptr.vmem [resolvable:$false] %s844_s11 }
  0x74   : > { %641 = vmatprep.subr.bf16.mxu0 %v933_v0  ;;  %v654_v19 = vpack.c.bf16 %v332_v18, %v331_v17  ;;  %v334_v21 = vld [vmem:[#allocation7 + $0x68] sm:$0xff]  ;;  %v335_v23 = vld [vmem:[#allocation7 + $0x70] sm:$0xff]  ;;  %v336_v24 = vld [vmem:[#allocation7 + $0x78] sm:$0xff]  ;;  %s846_s9 = scalar_lea.vmem %s845_s11, 256  ;;  %p847_p6 = scmp.lt.s32.totalorder %s1184_s20, %s845_s11 }
  0x75   : > { %v657_v22 = vpack.c.bf16 %v334_v21, %v333_v20  ;;  %v660_v25 = vpack.c.bf16 %v336_v24, %v335_v23  ;;  %v318_v26 = vld [vmem:[%s1156_s19] sm:$0xff]  ;;  %v319_v27 = vld [vmem:[#allocation5] sm:$0xff]  ;;  %s1182_s19 = scalar_lea.hbm %s1237_s6, %s583_s17  ;;  %p842_p4 = pnand %p841_p1, %p1098_p8 }
  0x76   : > { %v320_v28 = vadd.f32 %v319_v27, %v318_v26  ;;  %v579_v29 = vld [vmem:[%s1234_s3] ss:$0 sm:$0xff]  ;;  %p848_p12 = scmp.lt.s32.totalorder %s846_s9, %s840_s7 }
  0x77   : > { %643 = vmatpush3.bf16.msra.mxu0 %v642_v7  ;;  %v580_v44 = vld [vmem:[%s1235_s4] ss:$0 sm:$0xff]  ;;  %p843_p2 = pneg %p842_p4 }
  0x78   : > { %644 = vmatprep.subr.bf16.mxu0 %v933_v0  ;;  %v581_v46 = vld [vmem:[%s1236_s5] ss:$0 sm:$0xff]  ;;  %p849_p0 = por %p848_p12, %p847_p6 }
  0x7a   : > { %p850_p5 = pnand %p849_p0, %p843_p2 }
  0x7b   : > { %646 = vmatpush3.bf16.msra.mxu0 %v645_v10 }
  0x7c   : > { %647 = vmatprep.subr.bf16.mxu0 %v933_v0 }
  0x7f   : > { %649 = vmatpush3.bf16.msra.mxu0 %v648_v13 }
  0x80   : > { %650 = vmatprep.subr.bf16.mxu0 %v933_v0 }
  0x83   : > { %652 = vmatpush3.bf16.msra.mxu0 %v651_v16 }
  0x84   : > { %653 = vmatprep.subr.bf16.mxu0 %v933_v0 }
  0x87   : > { %655 = vmatpush3.bf16.msra.mxu0 %v654_v19 }
  0x88   : > { %656 = vmatprep.subr.bf16.mxu0 %v933_v0 }
  0x8b   : > { %658 = vmatpush3.bf16.msra.mxu0 %v657_v22 }
  0x8c   : > { %659 = vmatprep.subr.bf16.mxu0 %v933_v0 }
  0x8f   : > { %661 = vmatpush3.bf16.msra.mxu0 %v660_v25 }
  0x92   : > { %636 = vmatmul.mubr.f32.vlgmr.msra.gmra.mrb[0].mxu0 %v320_v28 }
 0x165   : > { %v410_v30 = vpop.f32.mrb[0].mxu0 }
 0x166   : > { %v411_v31 = vadd.f32 %v579_v29, %v410_v30  ;;  %v637_v32 = vpop.f32.mrb[1].mxu0 }
 0x168   : > { %414 = vadd.xlane.f32.xlu0 %v411_v31  ;;  %v417_v33 = vmul.f32 %v411_v31, %v411_v31 }
 0x16c   : > { %418 = vadd.xlane.f32.xlu0 %v417_v33 }
 0x1f5   : > { %v415_v34 = vpop.xlane.xlu0 %414 }
 0x1f6   : > { %v416_v35 = vmul.f32 0.0078125, %v415_v34 }
 0x1f8   : > { %v421_v37 = vmul.f32 %v416_v35, %v416_v35  ;;  %v424_v42 = vsub.f32 %v411_v31, %v416_v35 }
 0x1f9   : > { %v419_v36 = vpop.xlane.xlu0 %418 }
 0x1fa   : > { %v420_v38 = vmul.f32 0.0078125, %v419_v36 }
 0x1fc   : > { %v422_v39 = vsub.f32 %v420_v38, %v421_v37 }
 0x1fe   : > { %v423_v40 = vmax.f32 %v422_v39, 0.0 }
 0x200   : > { %v425_v41 = vadd.f32 1e-05, %v423_v40 }
 0x202   : > { %750 = vrsqrt.f32 %v425_v41 }
 0x20c   : > { %v751_v43 = vpop.eup %750 }
 0x20d   : > { %v427_v45 = vmul.f32 %v751_v43, %v424_v42 }
 0x20f   : > { %v435_v47 = vmul.f32 %v580_v44, %v427_v45 }
 0x211   : > { %v443_v48 = vadd.f32 %v581_v46, %v435_v47 }
 0x213   : > { %v445_v49 = vmul.f32 0.70710677, %v443_v48  ;;  %v444_v51 = vmul.f32 0.5, %v443_v48 }
 0x215   : > { %752 = verf.f32 %v445_v49 }
 0x21f   : > { %v753_v50 = vpop.eup %752 }
 0x220   : > { %v447_v52 = vadd.f32 1.0, %v753_v50 }
 0x222   : > { %v448_v53 = vmul.f32 %v447_v52, %v444_v51 }
 0x224   : > { %449 = vst [vmem:[%s317_s13] sm:$0xff] %v448_v53 }
 0x225   : > { %853 = shalt.err (!%p850_p5)
}
 0x226   : > { %s854_s14 = scalar_lea.hbm %s1182_s19, 128  ;;  %s858_s15 = scalar_lea.hbm %s1237_s6, 256 }
 0x227   : > { %p855_p10 = scmp.ne.s32.totalorder %s1182_s19, %s854_s14  ;;  %p859_p7 = scmp.lt.u32.totalorder %s1182_s19, %s1237_s6 }
 0x228   : > { %p860_p3 = scmp.lt.u32.totalorder %s858_s15, %s854_s14  ;;  %p862_p1 = scmp.lt.u32.totalorder %s854_s14, %s1182_s19 }
 0x229   : > { %p856_p13 = pnand %p855_p10, %p1098_p8 }
 0x22a   : > { %p861_p11 = por %p860_p3, %p859_p7 }
 0x22b   : > { %p857_p9 = pneg %p856_p13 }
 0x22c   : > { %p863_p4 = por %p862_p1, %p861_p11 }
 0x22e   : > { %p864_p2 = pnand %p863_p4, %p857_p9 }
 0x230   : > { %867 = shalt.err (!%p864_p2)
}
 0x231   : > { %672 = dma.vmem_to_hbm [thread:$0]  (%p1098_p8), %s1184_s20, 128, %s1182_s19, %s451_s29  }
 0x232 PF: > { %s477_s28 = sand.u32 1, %s906_s21   ;;  %p1254_p6 = scmp.ne.s32.totalorder %s1245_s8, 0 }
 0x233   : > { %p1255_p12 = scmp.ge.s32.totalorder %s926_s26, 2  ;;  %s478_s30 = scalar_lea.sflag [#allocation4], %s477_s28 }
 0x235   : > { %p686_p0 = pnand %p1255_p12, %p1254_p6 }
 0x237   : > { %901 = dma.done.wait (!%p686_p0), %s478_s30, 128  }
 0x238   : > { %903 = vsyncadd (!%p686_p0), %s478_s30, 4294967168  ;;  %s23_s26 = sadd.s32 1, %s926_s26   ;;  %s1256_s21 = smov %s910_s22 }
 0x239   : > { %p20_p5 = scmp.ge.s32.totalorder %s23_s26, 4   ;;  %s1257_s22 = smov %s914_s23 }
 0x23a   : > { %s1258_s23 = smov %s1107_s27  ;;  %s1259_s24 = smov %s922_s25 }
 0x23b   : > { %s1260_s25 = smov %s1262_s16  ;;  %22 = sbr.rel (!%p20_p5) target bundleno = 7 (0x7), region = 98 }
 0x242   :  { %483 = vsyncpa [#allocation3], 1 }
 0x243   :  { %485 = vsyncpa [#allocation3 + $0x1], 1 }
 0x244   :  { %486 = vsyncpa [#allocation6], 1 }
 0x245   :  { %487 = vsyncpa [#allocation4], 1 }
 0x246   :  { %489 = vsyncpa [#allocation4 + $0x1], 1 }

</bundles_post_ra>
